<compile_context>
chip_gen: v7x
topology: tpu7x:2x2x1
jax: 0.10.0
libtpu: 0.0.40
codegen_flags: <defaults>
</compile_context>

<pallas_src>
import jax
import jax.numpy as jnp
from jax.experimental import pallas as pl
from jax.experimental.pallas import tpu as pltpu


def _round_up(x, m):
    return (x + m - 1) // m * m


def _vmem_capacity_bytes():
    """Physical VMEM per TensorCore; conservative fallback if the query is unavailable."""
    try:
        info = pltpu.get_tpu_info()
        cap = getattr(info, "vmem_capacity_bytes", None)
        if cap:
            return int(cap)
    except Exception:
        pass
    return 64 * 1024 * 1024  # v7x per-TC VMEM: the smallest of current generations


def _make_fused_mlp_kernel(num_layers):
    """Fused L-layer kernel: o = Lin_L(... PReLU(Lin_1(x)) ...) for one row tile."""

    def kernel(a_ref, x_ref, *rest):
        w_refs = rest[:num_layers]
        o_ref = rest[num_layers]
        a = a_ref[0]                                # PReLU slope: one SMEM scalar read
        h = x_ref[...].astype(w_refs[0].dtype)      # cast to MXU dtype (no-op for f32)
        for i in range(num_layers):                 # unrolled (num_layers is static)
            y = jnp.dot(h, w_refs[i][...], preferred_element_type=jnp.float32)
            if i < num_layers - 1:
                y = jnp.where(y > 0.0, y, a * y)    # PReLU on the f32 accumulator
                h = y.astype(w_refs[i + 1].dtype)   # back to MXU dtype for next layer
            else:
                h = y
        o_ref[...] = h.astype(o_ref.dtype)

    return kernel


def feed_forward_net(x, weights_t, prelu_a, *, tile_m=1024,
                     matmul_dtype=jnp.bfloat16, out_dtype=jnp.float32):
    """Forward pass matching FeedForwardNet.forward (dropout=0 / eval -> identity).

    x:            (N, d_in) float32 activations (read at natural HBM width/dtype).
    weights_t:    list of (d_in_i, d_out_i) float32, pre-transposed from PyTorch (out, in).
    prelu_a:      (1,) float32 shared PReLU slope.
    matmul_dtype: MXU input dtype. bf16 is the fast path on v5e/v6e/v7x (accumulation
                  and PReLU stay f32 either way); jnp.float32 for a strict path.
                  Note: intermediate activations are rounded to this dtype between
                  layers (accuracy/throughput trade).
    out_dtype:    HBM dtype of the result (bf16 halves writeback bytes if tolerated).
    """
    num_layers = len(weights_t)
    n, d_in = x.shape
    d_out = weights_t[-1].shape[1]
    assert weights_t[0].shape[0] == d_in
    if n == 0:
        return jnp.zeros((0, d_out), out_dtype)

    # Feature widths: d_in stays natural; hidden/output widths padded to 128 lanes.
    dims = [d_in] + [w.shape[1] for w in weights_t]
    k_dims = [d_in] + [_round_up(d, 128) for d in dims[1:-1]]
    n_dims = [_round_up(d, 128) for d in dims[1:]]
    d_last_p = n_dims[-1]

    # Weights: zero-pad + cast to the MXU dtype once; padded rows/cols contribute zero.
    w_cast = []
    for i, w in enumerate(weights_t):
        wp = jnp.zeros((k_dims[i], n_dims[i]), matmul_dtype)
        wp = wp.at[: w.shape[0], : w.shape[1]].set(w.astype(matmul_dtype))
        w_cast.append(wp)

    mm_isz = jnp.dtype(matmul_dtype).itemsize
    out_isz = jnp.dtype(out_dtype).itemsize
    x_isz = jnp.dtype(x.dtype).itemsize
    w_bytes = sum(k_dims[i] * n_dims[i] * mm_isz for i in range(num_layers))
    max_feat = max([d_in] + n_dims)

    def vmem_need(tm_, w_buf):
        return (w_buf * w_bytes                     # weight blocks (constant index_map)
                + 2 * tm_ * d_in * x_isz            # double-buffered x row tiles
                + 2 * tm_ * d_last_p * out_isz      # double-buffered output tiles
                + 2 * tm_ * max_feat * 4)           # ~2 live f32 intermediates

    # Row tile: biggest that fits the VMEM budget; ragged last tile handled by Pallas.
    budget = int(_vmem_capacity_bytes() * 3 // 4)
    tm = max(8, min(_round_up(tile_m, 8), _round_up(n, 8)))
    while tm > 8 and vmem_need(tm, 1) > budget:
        tm = max(8, _round_up(tm // 2, 8))
    # Megacore: guarantee >= 2 grid steps whenever there is more than one 8-row tile of
    # work so the "parallel" M axis can split across v7x's two TensorCores.
    if n > 8 and pl.cdiv(n, tm) < 2:
        tm = _round_up(pl.cdiv(n, 2), 8)
    grid_m = pl.cdiv(n, tm)

    # VMEM limit from actual need (+25% slack, at least the 32 MiB default), capped by
    # the physical budget of this generation.
    vmem_limit = int(min(budget, max(32 * 1024 * 1024, vmem_need(tm, 2) * 5 // 4)))

    out_shape = jax.ShapeDtypeStruct((n, d_last_p), out_dtype)
    n_eff = grid_m * tm
    cost = pl.CostEstimate(
        flops=2 * n_eff * sum(k_dims[i] * n_dims[i] for i in range(num_layers)),
        transcendentals=0,
        bytes_accessed=n * d_in * x_isz + w_bytes + n * d_last_p * out_isz,
    )

    def run(single_buffer_weights):
        in_specs = [
            pl.BlockSpec(memory_space=pltpu.SMEM),          # PReLU slope scalar
            pl.BlockSpec((tm, d_in), lambda i: (i, 0)),     # x row tile, natural width
            # TODO(synk): sweep pipeline_mode=pl.Buffered(3) on x if input DMA is exposed.
        ]
        for li in range(num_layers):
            kw = {}
            if single_buffer_weights:
                kw["pipeline_mode"] = pl.Buffered(1)        # constant block -> 1 buffer
            in_specs.append(
                pl.BlockSpec((k_dims[li], n_dims[li]), lambda i: (0, 0), **kw))
        return pl.pallas_call(
            _make_fused_mlp_kernel(num_layers),
            out_shape=out_shape,
            grid=(grid_m,),
            in_specs=in_specs,
            out_specs=pl.BlockSpec((tm, d_last_p), lambda i: (i, 0)),
            compiler_params=pltpu.CompilerParams(
                dimension_semantics=("parallel",),          # M axis shards across TCs
                vmem_limit_bytes=vmem_limit,
            ),
            cost_estimate=cost,
        )(prelu_a, x, *w_cast)

    try:
        out = jax.block_until_ready(run(True))
    except Exception:
        # Fallback if single-buffered constant blocks are rejected by this jax version.
        out = run(False)

    return out if d_out == d_last_p else out[:, :d_out]


def init_params(key, in_dim, hidden_dim, out_dim, num_layers):
    """Deterministic parameter init. Weights stored pre-transposed as (in, out)."""
    if num_layers == 1:
        shapes = [(in_dim, out_dim)]
    else:
        shapes = [(in_dim, hidden_dim)]
        shapes += [(hidden_dim, hidden_dim)] * (num_layers - 2)
        shapes += [(hidden_dim, out_dim)]

    weights_t = []
    for (di, do) in shapes:
        key, sub = jax.random.split(key)
        bound = 1.0 / jnp.sqrt(di)  # nn.Linear default scale 1/sqrt(fan_in)
        w = jax.random.uniform(sub, (di, do), jnp.float32, -bound, bound)
        weights_t.append(w)

    prelu_a = jnp.array([0.25], dtype=jnp.float32)  # nn.PReLU() default init
    return weights_t, prelu_a


def reference_forward(x, weights_t, prelu_a):
    """Pure-JAX reference of FeedForwardNet.forward for correctness checks."""
    num_layers = len(weights_t)
    for i, w_t in enumerate(weights_t):
        x = x @ w_t
        if i < num_layers - 1:
            x = jnp.where(x > 0.0, x, prelu_a[0] * x)
    return x


if __name__ == "__main__":
    key = jax.random.PRNGKey(0)

    configs = [
        # (N, in_dim, hidden_dim, out_dim, num_layers)
        (16, 32, 32, 16, 3),    # small 3-layer MLP
        (21, 40, 48, 10, 2),    # batch not a multiple of 8, odd feature dims
        (8, 24, 0, 12, 1),      # single-layer branch (no PReLU)
        (300, 40, 64, 10, 3),   # multi-step grid with a ragged last row tile
    ]

    for (N, IN_DIM, HIDDEN_DIM, OUT_DIM, NUM_LAYERS) in configs:
        key, xkey, pkey = jax.random.split(key, 3)
        x = jax.random.normal(xkey, (N, IN_DIM), dtype=jnp.float32)
        weights_t, prelu_a = init_params(pkey, IN_DIM, HIDDEN_DIM, OUT_DIM, NUM_LAYERS)
        ref = reference_forward(x, weights_t, prelu_a)

        # f32 MXU path: strict check.
        out_f32 = jax.block_until_ready(
            feed_forward_net(x, weights_t, prelu_a, matmul_dtype=jnp.float32))
        assert out_f32.shape == (N, OUT_DIM)
        assert jnp.allclose(out_f32, ref, atol=1e-5, rtol=1e-5), "f32 mismatch vs reference"

        # Default bf16 MXU fast path (f32 accumulation): loose tolerance expected.
        out_bf16 = jax.block_until_ready(feed_forward_net(x, weights_t, prelu_a))
        assert out_bf16.shape == (N, OUT_DIM)
        assert jnp.allclose(out_bf16, ref, atol=5e-2, rtol=5e-2), "bf16 mismatch vs reference"

    print("KERNEL_OK")
</pallas_src>

<mosaic_0001>
module attributes {stable_mosaic.version = 11 : i64} {
  func.func @kernel(%arg0: i32, %arg1: memref<1xf32, #tpu.memory_space<smem>>, %arg2: memref<8x32xf32, #tpu.memory_space<vmem>>, %arg3: memref<32x128xf32, #tpu.memory_space<vmem>>, %arg4: memref<128x128xf32, #tpu.memory_space<vmem>>, %arg5: memref<128x128xf32, #tpu.memory_space<vmem>>, %arg6: memref<8x128xf32, #tpu.memory_space<vmem>>) attributes {dimension_semantics = [#tpu.dimension_semantics<parallel>], iteration_bounds = array<i64: 2>, scalar_prefetch = 0 : i64, scratch_operands = 0 : i64, tpu.core_type = #tpu.core_type<tc>, window_params = [{transform_indices = @transform_0, window_bounds = array<i64: 1>}, {transform_indices = @transform_1, window_bounds = array<i64: 8, 32>}, {pipeline_mode = #tpu.pipeline_mode<synchronous>, transform_indices = @transform_2, window_bounds = array<i64: 32, 128>}, {pipeline_mode = #tpu.pipeline_mode<synchronous>, transform_indices = @transform_3, window_bounds = array<i64: 128, 128>}, {pipeline_mode = #tpu.pipeline_mode<synchronous>, transform_indices = @transform_4, window_bounds = array<i64: 128, 128>}, {transform_indices = @transform_5, window_bounds = array<i64: 8, 128>}]} {
    %c0 = arith.constant 0 : index
    %0 = memref.load %arg1[%c0] : memref<1xf32, #tpu.memory_space<smem>>
    %c0_0 = arith.constant 0 : index
    %c0_1 = arith.constant 0 : index
    %1 = vector.load %arg2[%c0_0, %c0_1] : memref<8x32xf32, #tpu.memory_space<vmem>>, vector<8x32xf32>
    %c0_2 = arith.constant 0 : index
    %c0_3 = arith.constant 0 : index
    %2 = vector.load %arg3[%c0_2, %c0_3] : memref<32x128xf32, #tpu.memory_space<vmem>>, vector<32x128xf32>
    %cst = arith.constant dense<0.000000e+00> : vector<8x128xf32>
    %3 = tpu.matmul %1, %2, %cst {dimension_numbers = #tpu.dot_dimension_numbers<[1], [0], [0], [1], [0, 0, 1, 1], [], []>} : vector<8x32xf32>, vector<32x128xf32>, vector<8x128xf32> -> vector<8x128xf32>
    %cst_4 = arith.constant 0.000000e+00 : f32
    %4 = vector.broadcast %cst_4 : f32 to vector<8x128xf32>
    %5 = arith.cmpf ogt, %3, %4 : vector<8x128xf32>
    %6 = vector.broadcast %0 : f32 to vector<8x128xf32>
    %7 = arith.mulf %6, %3 : vector<8x128xf32>
    %8 = arith.select %5, %3, %7 : vector<8x128xi1>, vector<8x128xf32>
    %c0_5 = arith.constant 0 : index
    %c0_6 = arith.constant 0 : index
    %9 = vector.load %arg4[%c0_5, %c0_6] : memref<128x128xf32, #tpu.memory_space<vmem>>, vector<128x128xf32>
    %cst_7 = arith.constant dense<0.000000e+00> : vector<8x128xf32>
    %10 = tpu.matmul %8, %9, %cst_7 {dimension_numbers = #tpu.dot_dimension_numbers<[1], [0], [0], [1], [0, 0, 1, 1], [], []>} : vector<8x128xf32>, vector<128x128xf32>, vector<8x128xf32> -> vector<8x128xf32>
    %cst_8 = arith.constant 0.000000e+00 : f32
    %11 = vector.broadcast %cst_8 : f32 to vector<8x128xf32>
    %12 = arith.cmpf ogt, %10, %11 : vector<8x128xf32>
    %13 = vector.broadcast %0 : f32 to vector<8x128xf32>
    %14 = arith.mulf %13, %10 : vector<8x128xf32>
    %15 = arith.select %12, %10, %14 : vector<8x128xi1>, vector<8x128xf32>
    %c0_9 = arith.constant 0 : index
    %c0_10 = arith.constant 0 : index
    %16 = vector.load %arg5[%c0_9, %c0_10] : memref<128x128xf32, #tpu.memory_space<vmem>>, vector<128x128xf32>
    %cst_11 = arith.constant dense<0.000000e+00> : vector<8x128xf32>
    %17 = tpu.matmul %15, %16, %cst_11 {dimension_numbers = #tpu.dot_dimension_numbers<[1], [0], [0], [1], [0, 0, 1, 1], [], []>} : vector<8x128xf32>, vector<128x128xf32>, vector<8x128xf32> -> vector<8x128xf32>
    %c0_12 = arith.constant 0 : index
    %c0_13 = arith.constant 0 : index
    %18 = vector.load %arg6[%c0_12, %c0_13] : memref<8x128xf32, #tpu.memory_space<vmem>>, vector<8x128xf32>
    tpu.vector_store %arg6[%c0_12, %c0_13], %17 {strides = array<i32>} : memref<8x128xf32, #tpu.memory_space<vmem>>, vector<8x128xf32>,
    return
  }
  func.func @transform_0(%arg0: i32) -> i32 {
    %c0_i32 = arith.constant 0 : i32
    %c0_i32_0 = arith.constant 0 : i32
    return %c0_i32 : i32
  }
  func.func @transform_1(%arg0: i32) -> (i32, i32) {
    %c0_i32 = arith.constant 0 : i32
    %c0_i32_0 = arith.constant 0 : i32
    return %arg0, %c0_i32 : i32, i32
  }
  func.func @transform_2(%arg0: i32) -> (i32, i32) {
    %c0_i32 = arith.constant 0 : i32
    %c0_i32_0 = arith.constant 0 : i32
    %c0_i32_1 = arith.constant 0 : i32
    return %c0_i32, %c0_i32_0 : i32, i32
  }
  func.func @transform_3(%arg0: i32) -> (i32, i32) {
    %c0_i32 = arith.constant 0 : i32
    %c0_i32_0 = arith.constant 0 : i32
    %c0_i32_1 = arith.constant 0 : i32
    return %c0_i32, %c0_i32_0 : i32, i32
  }
  func.func @transform_4(%arg0: i32) -> (i32, i32) {
    %c0_i32 = arith.constant 0 : i32
    %c0_i32_0 = arith.constant 0 : i32
    %c0_i32_1 = arith.constant 0 : i32
    return %c0_i32, %c0_i32_0 : i32, i32
  }
  func.func @transform_5(%arg0: i32) -> (i32, i32) {
    %c0_i32 = arith.constant 0 : i32
    %c0_i32_0 = arith.constant 0 : i32
    return %arg0, %c0_i32 : i32, i32
  }
}

module attributes {stable_mosaic.version = 11 : i64} {
  func.func @kernel(%arg0: i32, %arg1: memref<1xf32, #tpu.memory_space<smem>>, %arg2: memref<8x32xf32, #tpu.memory_space<vmem>>, %arg3: memref<32x128xf32, #tpu.memory_space<vmem>>, %arg4: memref<128x128xf32, #tpu.memory_space<vmem>>, %arg5: memref<128x128xf32, #tpu.memory_space<vmem>>, %arg6: memref<8x128xf32, #tpu.memory_space<vmem>>) attributes {dimension_semantics = [#tpu.dimension_semantics<parallel>], iteration_bounds = array<i64: 2>, scalar_prefetch = 0 : i64, scratch_operands = 0 : i64, tpu.core_type = #tpu.core_type<tc>, window_params = [{transform_indices = @transform_0, window_bounds = array<i64: 1>}, {transform_indices = @transform_1, window_bounds = array<i64: 8, 32>}, {pipeline_mode = #tpu.pipeline_mode<synchronous>, transform_indices = @transform_2, window_bounds = array<i64: 32, 128>}, {pipeline_mode = #tpu.pipeline_mode<synchronous>, transform_indices = @transform_3, window_bounds = array<i64: 128, 128>}, {pipeline_mode = #tpu.pipeline_mode<synchronous>, transform_indices = @transform_4, window_bounds = array<i64: 128, 128>}, {transform_indices = @transform_5, window_bounds = array<i64: 8, 128>}]} {
    %c0 = arith.constant 0 : index
    %0 = memref.load %arg1[%c0] : memref<1xf32, #tpu.memory_space<smem>>
    %c0_0 = arith.constant 0 : index
    %c0_1 = arith.constant 0 : index
    %1 = vector.load %arg2[%c0_0, %c0_1] : memref<8x32xf32, #tpu.memory_space<vmem>>, vector<8x32xf32>
    %c0_2 = arith.constant 0 : index
    %c0_3 = arith.constant 0 : index
    %2 = vector.load %arg3[%c0_2, %c0_3] : memref<32x128xf32, #tpu.memory_space<vmem>>, vector<32x128xf32>
    %cst = arith.constant dense<0.000000e+00> : vector<8x128xf32>
    %3 = tpu.matmul %1, %2, %cst {dimension_numbers = #tpu.dot_dimension_numbers<[1], [0], [0], [1], [0, 0, 1, 1], [], []>} : vector<8x32xf32>, vector<32x128xf32>, vector<8x128xf32> -> vector<8x128xf32>
    %cst_4 = arith.constant 0.000000e+00 : f32
    %4 = vector.broadcast %cst_4 : f32 to vector<8x128xf32>
    %5 = arith.cmpf ogt, %3, %4 : vector<8x128xf32>
    %6 = vector.broadcast %0 : f32 to vector<8x128xf32>
    %7 = arith.mulf %6, %3 : vector<8x128xf32>
    %8 = arith.select %5, %3, %7 : vector<8x128xi1>, vector<8x128xf32>
    %c0_5 = arith.constant 0 : index
    %c0_6 = arith.constant 0 : index
    %9 = vector.load %arg4[%c0_5, %c0_6] : memref<128x128xf32, #tpu.memory_space<vmem>>, vector<128x128xf32>
    %cst_7 = arith.constant dense<0.000000e+00> : vector<8x128xf32>
    %10 = tpu.matmul %8, %9, %cst_7 {dimension_numbers = #tpu.dot_dimension_numbers<[1], [0], [0], [1], [0, 0, 1, 1], [], []>} : vector<8x128xf32>, vector<128x128xf32>, vector<8x128xf32> -> vector<8x128xf32>
    %cst_8 = arith.constant 0.000000e+00 : f32
    %11 = vector.broadcast %cst_8 : f32 to vector<8x128xf32>
    %12 = arith.cmpf ogt, %10, %11 : vector<8x128xf32>
    %13 = vector.broadcast %0 : f32 to vector<8x128xf32>
    %14 = arith.mulf %13, %10 : vector<8x128xf32>
    %15 = arith.select %12, %10, %14 : vector<8x128xi1>, vector<8x128xf32>
    %c0_9 = arith.constant 0 : index
    %c0_10 = arith.constant 0 : index
    %16 = vector.load %arg5[%c0_9, %c0_10] : memref<128x128xf32, #tpu.memory_space<vmem>>, vector<128x128xf32>
    %cst_11 = arith.constant dense<0.000000e+00> : vector<8x128xf32>
    %17 = tpu.matmul %15, %16, %cst_11 {dimension_numbers = #tpu.dot_dimension_numbers<[1], [0], [0], [1], [0, 0, 1, 1], [], []>} : vector<8x128xf32>, vector<128x128xf32>, vector<8x128xf32> -> vector<8x128xf32>
    %c0_12 = arith.constant 0 : index
    %c0_13 = arith.constant 0 : index
    %18 = vector.load %arg6[%c0_12, %c0_13] : memref<8x128xf32, #tpu.memory_space<vmem>>, vector<8x128xf32>
    tpu.vector_store %arg6[%c0_12, %c0_13], %17 {strides = array<i32>} : memref<8x128xf32, #tpu.memory_space<vmem>>, vector<8x128xf32>,
    return
  }
  func.func @transform_0(%arg0: i32) -> i32 {
    %c0_i32 = arith.constant 0 : i32
    %c0_i32_0 = arith.constant 0 : i32
    return %c0_i32 : i32
  }
  func.func @transform_1(%arg0: i32) -> (i32, i32) {
    %c0_i32 = arith.constant 0 : i32
    %c0_i32_0 = arith.constant 0 : i32
    return %arg0, %c0_i32 : i32, i32
  }
  func.func @transform_2(%arg0: i32) -> (i32, i32) {
    %c0_i32 = arith.constant 0 : i32
    %c0_i32_0 = arith.constant 0 : i32
    %c0_i32_1 = arith.constant 0 : i32
    return %c0_i32, %c0_i32_0 : i32, i32
  }
  func.func @transform_3(%arg0: i32) -> (i32, i32) {
    %c0_i32 = arith.constant 0 : i32
    %c0_i32_0 = arith.constant 0 : i32
    %c0_i32_1 = arith.constant 0 : i32
    return %c0_i32, %c0_i32_0 : i32, i32
  }
  func.func @transform_4(%arg0: i32) -> (i32, i32) {
    %c0_i32 = arith.constant 0 : i32
    %c0_i32_0 = arith.constant 0 : i32
    %c0_i32_1 = arith.constant 0 : i32
    return %c0_i32, %c0_i32_0 : i32, i32
  }
  func.func @transform_5(%arg0: i32) -> (i32, i32) {
    %c0_i32 = arith.constant 0 : i32
    %c0_i32_0 = arith.constant 0 : i32
    return %arg0, %c0_i32 : i32, i32
  }
}

</mosaic_0001>

<bundles_post_ra>
// kernel: tpu_custom_call.1
= control target key start
LH: loop header
LB: loop body
LE: loop exit
PB: predicated region body
PF: predicated region fallthrough
CT: control target
= control target key end

     0   :  { %s1457_s0 = inlined_call_operand.<no memory space> [shape: f32[1], index: 0, kind: input, shape index: {}]   ;;  %s1458_s1 = inlined_call_operand.hbm [shape: f32[16,32], index: 1, kind: input, shape index: {}]   ;;  %s1459_s2 = inlined_call_operand.hbm [shape: f32[32,128], index: 2, kind: input, shape index: {}]   ;;  %s1460_s3 = inlined_call_operand.hbm [shape: f32[128,128], index: 3, kind: input, shape index: {}]   ;;  %s1461_s4 = inlined_call_operand.hbm [shape: f32[128,128], index: 4, kind: input, shape index: {}]   ;;  %s1462_s5 = inlined_call_operand.hbm [shape: f32[16,128], index: 5, kind: output, shape index: {}]  }
   0x1   :  { %10 = sst [smem:[#allocation2]] %s1457_s0 }
   0x2   :  { %11 = vsyncpa [#allocation4], 0 }
   0x3   :  { %13 = vsyncpa [#allocation4 + $0x1], 0 }
   0x4   :  { %14 = vsyncpa [#allocation7], 0 }
   0x5   :  { %15 = vsyncpa [#allocation10], 0 }
   0x6   :  { %16 = vsyncpa [#allocation5], 0 }
   0x7   :  { %18 = vsyncpa [#allocation5 + $0x1], 0  ;;  %s1166_s20 = smov 0   ;;  %s1168_s21 = smov 0  }
   0x8   :  { %s1170_s22 = smov 0   ;;  %s1172_s23 = smov 0  }
   0x9 LB: > { %s1187_s0 = sadd.s32 4294967295, %s1121_s23   ;;  %s658_s24 = sadd.s32 4294967294, %s1121_s23   ;;  %s1121_s23 = sphi %s1172_s23, %s1485_s23   ;;  %s1117_s22 = sphi %s1170_s22, %s1484_s22   ;;  %s1113_s21 = sphi %s1168_s21, %s1483_s21   ;;  %s1109_s20 = sphi %s1166_s20, %s1482_s20  }
   0xa   : > { %p65_p0 = scmp.ne.s32.totalorder %s1113_s21, %s1109_s20  ;;  %p1463_p1 = scmp.eq.s32.totalorder %s1187_s0, 0 }
   0xb   : > { %p158_p3 = scmp.eq.s32.totalorder %s658_s24, 1  ;;  %p659_p5 = scmp.ge.s32.totalorder %s1121_s23, 1 }
   0xc   : > { %p1196_p4 = por %p1463_p1, %p65_p0  ;;  %p165_p7 = scmp.lt.s32.totalorder %s1121_s23, 3 }
   0xd   : > { %p1201_p6 = por %p158_p3, %p65_p0  ;;  %s1123_s28 = smov [#allocation6]  }
   0xe   : > { %s1466_s25 = scalar_select %p1196_p4, 1, 0 }
   0xf   : > { %s1467_s26 = scalar_select %p1201_p6, 1, 0 }
  0x10   : > { %p1206_p8 = pnand %p659_p5, %p165_p7  ;;  %s180_s29 = sshll.u32 %s1123_s28, 4  ;;  %s1210_s29 = int_to_ptr.vmem [resolvable:$true] %s180_s29 }
  0x11   : > { %s1124_s6 = smov [#allocation8]   ;;  %s1125_s8 = smov [#allocation9]  }
  0x12   : > { %s1468_s27 = scalar_select %p1206_p8, 1, 0 }
  0x13   : > { %p867_p9 = pneg %p1206_p8  ;;  %s193_s7 = sshll.u32 %s1124_s6, 4  ;;  %s1221_s7 = int_to_ptr.vmem [resolvable:$true] %s193_s7 }
  0x14   : > { %s1223_s9 = sshll.u32 %s1125_s8, 4  ;;  %s933_s12 = scalar_lea.hbm %s1459_s2, 512  ;;  %s207_s9 = int_to_ptr.vmem [resolvable:$true] %s1223_s9 }
  0x15   : > { %p1217_p11 = pnand %p867_p9, %p1463_p1  ;;  %p934_p12 = scmp.ne.s32.totalorder %s1459_s2, %s933_s12 }
  0x16   : > { %p940_p5 = scmp.lt.u32.totalorder %s933_s12, %s1459_s2 }
  0x17   : > { %p1233_p13 = pneg %p1217_p11 }
  0x19   : > { %p936_p0 = pnand %p1233_p13, %p934_p12 }
  0x1b   : > { %p937_p3 = pneg %p936_p0 }
  0x1d   : > { %p942_p7 = pnand %p940_p5, %p937_p3 }
  0x1f   : > { %945 = shalt.err (!%p942_p7)
}
  0x20   : > { %s946_s18 = scalar_lea.vmem %s1210_s29, 512  ;;  %p954_p2 = scmp.lt.s32.totalorder %s1210_s29, %s1210_s29 }
  0x21   : > { %p947_p9 = scmp.ne.s32.totalorder %s1210_s29, %s946_s18  ;;  %p955_p6 = scmp.lt.s32.totalorder %s946_s18, %s946_s18 }
  0x23   : > { %p949_p10 = pnand %p947_p9, %p1233_p13  ;;  %p956_p12 = por %p955_p6, %p954_p2 }
  0x25   : > { %p950_p1 = pneg %p949_p10 }
  0x27   : > { %p957_p0 = pnand %p956_p12, %p950_p1 }
  0x29   : > { %960 = shalt.err (!%p957_p0)
}
  0x2a   : > { %s1126_s19 = smov 128   ;;  %s1127_s24 = smov 8  }
  0x2b   : > { %870 = dma.hbm_to_vmem [thread:$0]  (!%p1217_p11), %s1459_s2, 512, %s1210_s29, [#allocation7], %s1126_s19, %s1126_s19, %s1127_s24  }
  0x2c   : > { %s961_s11 = scalar_lea.hbm %s1460_s3, 2048 }
  0x2d   : > { %p962_p1 = scmp.ne.s32.totalorder %s1460_s3, %s961_s11  ;;  %p968_p10 = scmp.lt.u32.totalorder %s961_s11, %s1460_s3 }
  0x2f   : > { %p964_p2 = pnand %p962_p1, %p1233_p13 }
  0x31   : > { %p965_p6 = pneg %p964_p2 }
  0x33   : > { %p970_p3 = pnand %p968_p10, %p965_p6 }
  0x35   : > { %973 = shalt.err (!%p970_p3)
}
  0x36   : > { %s974_s29 = scalar_lea.vmem %s1221_s7, 2048  ;;  %p982_p12 = scmp.lt.s32.totalorder %s1221_s7, %s1221_s7 }
  0x37   : > { %p975_p5 = scmp.ne.s32.totalorder %s1221_s7, %s974_s29  ;;  %p983_p0 = scmp.lt.s32.totalorder %s974_s29, %s974_s29 }
  0x39   : > { %p977_p7 = pnand %p975_p5, %p1233_p13  ;;  %p984_p1 = por %p983_p0, %p982_p12 }
  0x3b   : > { %p978_p9 = pneg %p977_p7 }
  0x3d   : > { %p985_p2 = pnand %p984_p1, %p978_p9 }
  0x3f   : > { %988 = shalt.err (!%p985_p2)
}
  0x40   : > { %873 = dma.hbm_to_vmem [thread:$0]  (!%p1217_p11), %s1460_s3, 2048, %s1221_s7, [#allocation7], %s1126_s19, %s1126_s19, %s1127_s24  }
  0x41   : > { %s989_s8 = scalar_lea.hbm %s1461_s4, 2048 }
  0x42   : > { %p990_p6 = scmp.ne.s32.totalorder %s1461_s4, %s989_s8  ;;  %p996_p5 = scmp.lt.u32.totalorder %s989_s8, %s1461_s4 }
  0x44   : > { %p992_p10 = pnand %p990_p6, %p1233_p13 }
  0x46   : > { %p993_p3 = pneg %p992_p10 }
  0x48   : > { %p998_p7 = pnand %p996_p5, %p993_p3 }
  0x4a   : > { %1001 = shalt.err (!%p998_p7)
}
  0x4b   : > { %s1002_s14 = scalar_lea.vmem %s207_s9, 2048  ;;  %p1010_p1 = scmp.lt.s32.totalorder %s207_s9, %s207_s9 }
  0x4c   : > { %p1003_p9 = scmp.ne.s32.totalorder %s207_s9, %s1002_s14  ;;  %p1011_p2 = scmp.lt.s32.totalorder %s1002_s14, %s1002_s14 }
  0x4e   : > { %p1005_p12 = pnand %p1003_p9, %p1233_p13  ;;  %p1012_p4 = por %p1011_p2, %p1010_p1 }
  0x50   : > { %p1006_p0 = pneg %p1005_p12 }
  0x52   : > { %p1013_p8 = pnand %p1012_p4, %p1006_p0 }
  0x54   : > { %1016 = shalt.err (!%p1013_p8)
}
  0x55   : > { %876 = dma.hbm_to_vmem [thread:$0]  (!%p1217_p11), %s1461_s4, 2048, %s207_s9, [#allocation10], %s1126_s19, %s1126_s19, %s1127_s24  }
  0x56   : > { %s1306_s15 = sadd.s32 1, %s1121_s23   ;;  %s52_s29 = sadd.s32 1, %s1117_s22 }
  0x57   : > { %s49_s30 = ssub.s32 %s1121_s23, %s1306_s15  ;;  %p59_p8 = scmp.ne.s32.totalorder %s1117_s22, %s1113_s21 }
  0x58   : > { %p50_p4 = scmp.eq.s32.totalorder %s49_s30, 0  ;;  %p60_p13 = scmp.eq.s32.totalorder %s1121_s23, 0 }
  0x59   : > { %p888_p6 = scmp.lt.s32.totalorder %s1121_s23, 2  ;;  %p1471_p3 = scmp.eq.s32.totalorder %s1187_s0, 1 }
  0x5a   : > { %s1316_s17 = scalar_select %p50_p4, %s1117_s22, %s52_s29  }
  0x5b   : > { %p61_p10 = por %p60_p13, %p59_p8  ;;  %p1320_p5 = por %p1471_p3, %p59_p8 }
  0x5c   : > { %s220_s28 = sand.u32 1, %s1117_s22   ;;  %s665_s6 = sshll.u32 %s1121_s23, 7 }
  0x5d   : > { %s664_s9 = sshll.u32 %s220_s28, 3  ;;  %s1329_s8 = scalar_lea.hbm %s1458_s1, %s665_s6 }
  0x5e   : > { %s224_s10 = scalar_lea.vmem [#allocation3], %s664_s9  ;;  %p1331_p11 = pnand %p888_p6, %p61_p10 }
  0x5f   : > { %s231_s11 = sshll.u32 %s224_s10, 4  ;;  %s221_s13 = scalar_lea.sflag [#allocation4], %s220_s28  ;;  %s1335_s11 = int_to_ptr.vmem [resolvable:$true] %s231_s11 }
  0x60   : > { %s1017_s14 = scalar_lea.hbm %s1329_s8, 128  ;;  %p1019_p9 = pneg %p1331_p11 }
  0x61   : > { %p1018_p7 = scmp.ne.s32.totalorder %s1329_s8, %s1017_s14  ;;  %s1022_s30 = scalar_lea.hbm %s1458_s1, 256 }
  0x62   : > { %p1023_p1 = scmp.lt.u32.totalorder %s1329_s8, %s1458_s1  ;;  %p1024_p2 = scmp.lt.u32.totalorder %s1022_s30, %s1017_s14 }
  0x63   : > { %p1020_p12 = pnand %p1019_p9, %p1018_p7  ;;  %p1026_p8 = scmp.lt.u32.totalorder %s1017_s14, %s1329_s8 }
  0x64   : > { %p1025_p4 = por %p1024_p2, %p1023_p1 }
  0x65   : > { %p1021_p0 = pneg %p1020_p12 }
  0x66   : > { %p1027_p13 = por %p1026_p8, %p1025_p4 }
  0x68   : > { %p1028_p6 = pnand %p1027_p13, %p1021_p0 }
  0x6a   : > { %1031 = shalt.err (!%p1028_p6)
}
  0x6b   : > { %s1032_s28 = scalar_lea.vmem %s1335_s11, 128  ;;  %s1128_s9 = smov [#allocation3]  }
  0x6c   : > { %p1033_p10 = scmp.ne.s32.totalorder %s1335_s11, %s1032_s28  ;;  %s1037_s19 = sshll.u32 %s1128_s9, 4  ;;  %s1038_s19 = int_to_ptr.vmem [resolvable:$false] %s1037_s19 }
  0x6d   : > { %s1039_s24 = scalar_lea.vmem %s1038_s19, 256  ;;  %p1040_p12 = scmp.lt.s32.totalorder %s1335_s11, %s1038_s19 }
  0x6e   : > { %p1035_p3 = pnand %p1033_p10, %p1019_p9  ;;  %p1041_p1 = scmp.lt.s32.totalorder %s1039_s24, %s1032_s28 }
  0x70   : > { %p1036_p7 = pneg %p1035_p3  ;;  %p1042_p2 = por %p1041_p1, %p1040_p12 }
  0x72   : > { %p1043_p4 = pnand %p1042_p2, %p1036_p7 }
  0x74   : > { %1046 = shalt.err (!%p1043_p4)
}
  0x75   : > { %880 = dma.hbm_to_vmem [thread:$0]  (!%p1331_p11), %s1329_s8, 128, %s1335_s11, %s221_s13  }
  0x76   : > { %p1474_p0 = scmp.ne.s32.totalorder %s1468_s27, 0 }
  0x77   : > { %s1365_s10 = sand.u32 (!%p1474_p0), 1, %s1113_s21   ;;  %p1475_p9 = scmp.ne.s32.totalorder (!%p1474_p0), %s1466_s25, 0 }
  0x78   : > { %240 = sbr.rel (%p1474_p0) target bundleno = 802 (0x322), region = 40  ;;  %s667_s14 = sshll.u32 (!%p1474_p0), %s1365_s10, 3 }
  0x79   : > { %s243_s7 = scalar_lea.sflag (!%p1474_p0), [#allocation4], %s1365_s10  ;;  %s1371_s16 = scalar_lea.vmem (!%p1474_p0), [#allocation3], %s667_s14 }
  0x7f   : > { %1092 = dma.done.wait (%p1475_p9), %s243_s7, 128  }
  0x80   : > { %1094 = vsyncadd (%p1475_p9), %s243_s7, 4294967168  ;;  %p1476_p11 = scmp.eq.s32.totalorder %s1187_s0, 0 }
  0x82   : > { %1096 = dma.done.wait (%p1476_p11), [#allocation7], 2560   ;;  %p1477_p8 = pmov %p1476_p11 }
  0x84   : > { %1098 = vsyncadd (%p1477_p8), [#allocation7], 4294964736  ;;  %p1478_p13 = pmov %p1477_p8 }
  0x85   : > { %p1479_p6 = pmov %p1477_p8 }
  0x86   : > { %1100 = dma.done.wait (%p1478_p13), [#allocation10], 2048  }
  0x87   : > { %1102 = vsyncadd (%p1479_p6), [#allocation10], 4294965248  ;;  %v1129_v0 = vmov 0.0|0.0   ;;  %vm1130_vm0 = vmmov 0   ;;  %v1131_v1 = vmov 0.0   ;;  %v287_v2 = vld [vmem:[#allocation6] sm:$0xff] }
  0x88   : > { %797 = vmatprep.subr.bf16.mxu0 %v1129_v0  ;;  %724 = vmatprep.mubr.msk.f32.mxu0 %vm1130_vm0, %v1131_v1  ;;  %v288_v3 = vld [vmem:[#allocation6 + $0x8] sm:$0xff]  ;;  %v289_v4 = vld [vmem:[#allocation6 + $0x10] sm:$0xff]  ;;  %v290_v6 = vld [vmem:[#allocation6 + $0x18] sm:$0xff]  ;;  %vm291_vm1 = vcmask 261120   ;;  %s285_s25 = sld [smem:[#allocation2]]  ;;  %s284_s27 = scalar_lea.vmem [#allocation11], %s667_s14 }
  0x89   : > { %803 = vmatprep.subr.bf16.mxu1 %v1129_v0  ;;  %759 = vmatprep.mubr.msk.f32.mxu1 %vm1130_vm0, %v1131_v1  ;;  %v798_v5 = vpack.c.bf16 %v288_v3, %v287_v2  ;;  %v369_v7 = vld [vmem:[#allocation8] sm:$0xff]  ;;  %v370_v8 = vld [vmem:[#allocation8 + $0x8] sm:$0xff]  ;;  %v371_v9 = vld [vmem:[#allocation8 + $0x10] sm:$0xff]  ;;  %v801_v11 = vpack.c.bf16 %v290_v6, %v289_v4  ;;  %s559_s8 = sshll.u32 %s284_s27, 4  ;;  %s674_s11 = sshll.u32 %s1187_s0, 7  ;;  %s1410_s8 = int_to_ptr.vmem [resolvable:$true] %s559_s8 }
  0x8a   : > { %v372_v10 = vld [vmem:[#allocation8 + $0x18] sm:$0xff]  ;;  %v804_v12 = vpack.c.bf16 %v370_v8, %v369_v7  ;;  %v373_v14 = vld [vmem:[#allocation8 + $0x20] sm:$0xff]  ;;  %v374_v15 = vld [vmem:[#allocation8 + $0x28] sm:$0xff]  ;;  %s1415_s30 = scalar_lea.hbm %s1462_s5, %s674_s11  ;;  %s546_s29 = scalar_lea.sflag [#allocation5], %s1365_s10 }
  0x8b   : > { %799 = vmatpush3.bf16.msra.mxu0 %v798_v5  ;;  %v807_v13 = vpack.c.bf16 %v372_v10, %v371_v9  ;;  %v286_v16 = vld [vmem:[%s1371_s16] sm:$0xff]  ;;  %v810_v17 = vpack.c.bf16 %v374_v15, %v373_v14  ;;  %v377_v21 = vld [vmem:[#allocation8 + $0x40] sm:$0xff]  ;;  %v378_v22 = vld [vmem:[#allocation8 + $0x48] sm:$0xff]  ;;  %s1047_s6 = scalar_lea.vmem %s1410_s8, 128  ;;  %s1132_s0 = smov [#allocation11]  }
  0x8c   : > { %800 = vmatprep.subr.bf16.mxu0 %v1129_v0  ;;  %805 = vmatpush3.bf16.msra.mxu1 %v804_v12  ;;  %v375_v18 = vld [vmem:[#allocation8 + $0x30] sm:$0xff]  ;;  %v376_v19 = vld [vmem:[#allocation8 + $0x38] sm:$0xff]  ;;  %v816_v23 = vpack.c.bf16 %v378_v22, %v377_v21  ;;  %v381_v27 = vld [vmem:[#allocation8 + $0x60] sm:$0xff]  ;;  %p1048_p10 = scmp.ne.s32.totalorder %s1410_s8, %s1047_s6  ;;  %s1051_s28 = sshll.u32 %s1132_s0, 4  ;;  %s1052_s28 = int_to_ptr.vmem [resolvable:$false] %s1051_s28 }
  0x8d   : > { %806 = vmatprep.subr.bf16.mxu1 %v1129_v0  ;;  %v813_v20 = vpack.c.bf16 %v376_v19, %v375_v18  ;;  %v379_v24 = vld [vmem:[#allocation8 + $0x50] sm:$0xff]  ;;  %v380_v25 = vld [vmem:[#allocation8 + $0x58] sm:$0xff]  ;;  %v382_v28 = vld [vmem:[#allocation8 + $0x68] sm:$0xff]  ;;  %s1053_s9 = scalar_lea.vmem %s1052_s28, 256  ;;  %p1054_p12 = scmp.lt.s32.totalorder %s1410_s8, %s1052_s28 }
  0x8e   : > { %v819_v26 = vpack.c.bf16 %v380_v25, %v379_v24  ;;  %v822_v29 = vpack.c.bf16 %v382_v28, %v381_v27  ;;  %v383_v30 = vld [vmem:[#allocation8 + $0x70] sm:$0xff]  ;;  %v384_v31 = vld [vmem:[#allocation8 + $0x78] sm:$0xff]  ;;  %v458_v33 = vld [vmem:[#allocation9] sm:$0xff]  ;;  %v366_v54 = vstv %s285_s25  ;;  %p1049_p3 = pnand %p1048_p10, %p1320_p5  ;;  %p1055_p1 = scmp.lt.s32.totalorder %s1053_s9, %s1047_s6 }
  0x8f   : > { %802 = vmatpush3.bf16.msra.mxu0 %v801_v11  ;;  %v825_v32 = vpack.c.bf16 %v384_v31, %v383_v30  ;;  %v459_v34 = vld [vmem:[#allocation9 + $0x8] sm:$0xff]  ;;  %v460_v35 = vld [vmem:[#allocation9 + $0x10] sm:$0xff]  ;;  %v461_v37 = vld [vmem:[#allocation9 + $0x18] sm:$0xff] }
  0x90   : > { %827 = vmatprep.subr.bf16.mxu0 %v1129_v0  ;;  %808 = vmatpush3.bf16.msra.mxu1 %v807_v13  ;;  %v828_v36 = vpack.c.bf16 %v459_v34, %v458_v33  ;;  %v831_v38 = vpack.c.bf16 %v461_v37, %v460_v35  ;;  %v462_v39 = vld [vmem:[#allocation9 + $0x20] sm:$0xff]  ;;  %v463_v40 = vld [vmem:[#allocation9 + $0x28] sm:$0xff]  ;;  %v464_v42 = vld [vmem:[#allocation9 + $0x30] sm:$0xff]  ;;  %p1050_p7 = pneg %p1049_p3  ;;  %p1056_p2 = por %p1055_p1, %p1054_p12 }
  0x91   : > { %809 = vmatprep.subr.bf16.mxu1 %v1129_v0  ;;  %v834_v41 = vpack.c.bf16 %v463_v40, %v462_v39  ;;  %v465_v43 = vld [vmem:[#allocation9 + $0x38] sm:$0xff]  ;;  %v466_v45 = vld [vmem:[#allocation9 + $0x40] sm:$0xff]  ;;  %v467_v46 = vld [vmem:[#allocation9 + $0x48] sm:$0xff] }
  0x92   : > { %725 = vmatmul.mubr.msk.f32.vlgmr.msra.gmra.mrb[0].mxu0 %vm291_vm1, %v286_v16  ;;  %v837_v44 = vpack.c.bf16 %v465_v43, %v464_v42  ;;  %v840_v47 = vpack.c.bf16 %v467_v46, %v466_v45  ;;  %v468_v48 = vld [vmem:[#allocation9 + $0x50] sm:$0xff]  ;;  %v469_v49 = vld [vmem:[#allocation9 + $0x58] sm:$0xff]  ;;  %v470_v51 = vld [vmem:[#allocation9 + $0x60] sm:$0xff]  ;;  %p1057_p4 = pnand %p1056_p2, %p1050_p7 }
  0x93   : > { %794 = vmatprep.mubr.msk.f32.mxu0 %vm1130_vm0, %v1131_v1  ;;  %829 = vmatpush3.bf16.msra.mxu0 %v828_v36  ;;  %v843_v50 = vpack.c.bf16 %v469_v49, %v468_v48  ;;  %v471_v52 = vld [vmem:[#allocation9 + $0x68] sm:$0xff]  ;;  %v472_v59 = vld [vmem:[#allocation9 + $0x70] sm:$0xff]  ;;  %v473_v60 = vld [vmem:[#allocation9 + $0x78] sm:$0xff] }
  0x94   : > { %811 = vmatpush3.bf16.msra.mxu1 %v810_v17  ;;  %830 = vmatprep.subr.bf16.mxu0 %v1129_v0  ;;  %v846_v53 = vpack.c.bf16 %v471_v52, %v470_v51  ;;  %v849_v61 = vpack.c.bf16 %v473_v60, %v472_v59 }
  0x95   : > { %812 = vmatprep.subr.bf16.mxu1 %v1129_v0 }
  0x97   : > { %832 = vmatpush3.bf16.msra.mxu0 %v831_v38 }
  0x98   : > { %814 = vmatpush3.bf16.msra.mxu1 %v813_v20  ;;  %833 = vmatprep.subr.bf16.mxu0 %v1129_v0 }
  0x99   : > { %815 = vmatprep.subr.bf16.mxu1 %v1129_v0 }
  0x9b   : > { %835 = vmatpush3.bf16.msra.mxu0 %v834_v41 }
  0x9c   : > { %817 = vmatpush3.bf16.msra.mxu1 %v816_v23  ;;  %836 = vmatprep.subr.bf16.mxu0 %v1129_v0 }
  0x9d   : > { %818 = vmatprep.subr.bf16.mxu1 %v1129_v0 }
  0x9f   : > { %838 = vmatpush3.bf16.msra.mxu0 %v837_v44 }
  0xa0   : > { %820 = vmatpush3.bf16.msra.mxu1 %v819_v26  ;;  %839 = vmatprep.subr.bf16.mxu0 %v1129_v0 }
  0xa1   : > { %821 = vmatprep.subr.bf16.mxu1 %v1129_v0 }
  0xa3   : > { %841 = vmatpush3.bf16.msra.mxu0 %v840_v47 }
  0xa4   : > { %823 = vmatpush3.bf16.msra.mxu1 %v822_v29  ;;  %842 = vmatprep.subr.bf16.mxu0 %v1129_v0 }
  0xa5   : > { %824 = vmatprep.subr.bf16.mxu1 %v1129_v0 }
  0xa7   : > { %844 = vmatpush3.bf16.msra.mxu0 %v843_v50 }
  0xa8   : > { %826 = vmatpush3.bf16.msra.mxu1 %v825_v32  ;;  %845 = vmatprep.subr.bf16.mxu0 %v1129_v0 }
  0xab   : > { %847 = vmatpush3.bf16.msra.mxu0 %v846_v53 }
  0xac   : > { %848 = vmatprep.subr.bf16.mxu0 %v1129_v0 }
  0xaf   : > { %850 = vmatpush3.bf16.msra.mxu0 %v849_v61 }
 0x165   : > { %v361_v55 = vpop.f32.mrb[0].mxu0 }
 0x166   : > { %vm365_vm2 = vcmp.gt.f32.partialorder %v361_v55, 0.0  ;;  %v367_v56 = vmul.f32 %v366_v54, %v361_v55  ;;  %v726_v57 = vpop.f32.mrb[1].mxu0 }
 0x168   : > { %v368_v58 = vsel %vm365_vm2, %v361_v55, %v367_v56 }
 0x169   : > { %760 = vmatmul.mubr.f32.vlgmr.msra.gmra.mrb[0].mxu1 %v368_v58 }
 0x23c   : > { %v451_v62 = vpop.f32.mrb[0].mxu1 }
 0x23d   : > { %vm455_vm3 = vcmp.gt.f32.partialorder %v451_v62, 0.0  ;;  %v456_v63 = vmul.f32 %v451_v62, %v366_v54  ;;  %v761_v0 = vpop.f32.mrb[1].mxu1 }
 0x23f   : > { %v457_v1 = vsel %vm455_vm3, %v451_v62, %v456_v63 }
 0x240   : > { %795 = vmatmul.mubr.f32.vlgmr.msra.gmra.mrb[2].mxu0 %v457_v1 }
 0x313   : > { %v540_v2 = vpop.f32.mrb[2].mxu0 }
 0x314   : > { %544 = vst [vmem:[%s284_s27] sm:$0xff] %v540_v2  ;;  %v796_v3 = vpop.f32.mrb[3].mxu0 }
 0x315   : > { %1060 = shalt.err (!%p1057_p4)
}
 0x316   : > { %s1061_s19 = scalar_lea.hbm %s1415_s30, 128  ;;  %s1065_s14 = scalar_lea.hbm %s1462_s5, 256 }
 0x317   : > { %p1062_p0 = scmp.ne.s32.totalorder %s1415_s30, %s1061_s19  ;;  %p1066_p8 = scmp.lt.u32.totalorder %s1415_s30, %s1462_s5 }
 0x318   : > { %p1067_p13 = scmp.lt.u32.totalorder %s1065_s14, %s1061_s19  ;;  %p1069_p10 = scmp.lt.u32.totalorder %s1061_s19, %s1415_s30 }
 0x319   : > { %p1063_p9 = pnand %p1062_p0, %p1320_p5 }
 0x31a   : > { %p1068_p6 = por %p1067_p13, %p1066_p8 }
 0x31b   : > { %p1064_p11 = pneg %p1063_p9 }
 0x31c   : > { %p1070_p3 = por %p1069_p10, %p1068_p6 }
 0x31e   : > { %p1071_p7 = pnand %p1070_p3, %p1064_p11 }
 0x320   : > { %1074 = shalt.err (!%p1071_p7)
}
 0x321   : > { %865 = dma.vmem_to_hbm [thread:$0]  (%p1320_p5), %s1410_s8, 128, %s1415_s30, %s546_s29  }
 0x322 PF: > { %s571_s25 = sand.u32 1, %s1109_s20   ;;  %p1480_p12 = scmp.ne.s32.totalorder %s1467_s26, 0 }
 0x323   : > { %p1481_p1 = scmp.ge.s32.totalorder %s1121_s23, 2  ;;  %s572_s27 = scalar_lea.sflag [#allocation5], %s571_s25 }
 0x325   : > { %p882_p2 = pnand %p1481_p1, %p1480_p12 }
 0x327   : > { %1104 = dma.done.wait (!%p882_p2), %s572_s27, 128  }
 0x328   : > { %1106 = vsyncadd (!%p882_p2), %s572_s27, 4294967168  ;;  %p21_p4 = scmp.ge.s32.totalorder %s1306_s15, 4   ;;  %s1482_s20 = smov %s1113_s21 }
 0x329   : > { %s1483_s21 = smov %s1117_s22  ;;  %s1484_s22 = smov %s1316_s17 }
 0x32a   : > { %s1485_s23 = smov %s1306_s15  ;;  %23 = sbr.rel (!%p21_p4) target bundleno = 9 (0x9), region = 97 }
 0x331   :  { %577 = vsyncpa [#allocation4], 1 }
 0x332   :  { %579 = vsyncpa [#allocation4 + $0x1], 1 }
 0x333   :  { %580 = vsyncpa [#allocation7], 1 }
 0x334   :  { %581 = vsyncpa [#allocation10], 1 }
 0x335   :  { %582 = vsyncpa [#allocation5], 1 }
 0x336   :  { %584 = vsyncpa [#allocation5 + $0x1], 1 }

// kernel: tpu_custom_call.1
= control target key start
LH: loop header
LB: loop body
LE: loop exit
PB: predicated region body
PF: predicated region fallthrough
CT: control target
= control target key end

     0   :  { %s1457_s0 = inlined_call_operand.<no memory space> [shape: f32[1], index: 0, kind: input, shape index: {}]   ;;  %s1458_s1 = inlined_call_operand.hbm [shape: f32[16,32], index: 1, kind: input, shape index: {}]   ;;  %s1459_s2 = inlined_call_operand.hbm [shape: f32[32,128], index: 2, kind: input, shape index: {}]   ;;  %s1460_s3 = inlined_call_operand.hbm [shape: f32[128,128], index: 3, kind: input, shape index: {}]   ;;  %s1461_s4 = inlined_call_operand.hbm [shape: f32[128,128], index: 4, kind: input, shape index: {}]   ;;  %s1462_s5 = inlined_call_operand.hbm [shape: f32[16,128], index: 5, kind: output, shape index: {}]  }
   0x1   :  { %10 = sst [smem:[#allocation2]] %s1457_s0 }
   0x2   :  { %11 = vsyncpa [#allocation4], 0 }
   0x3   :  { %13 = vsyncpa [#allocation4 + $0x1], 0 }
   0x4   :  { %14 = vsyncpa [#allocation7], 0 }
   0x5   :  { %15 = vsyncpa [#allocation10], 0 }
   0x6   :  { %16 = vsyncpa [#allocation5], 0 }
   0x7   :  { %18 = vsyncpa [#allocation5 + $0x1], 0  ;;  %s1166_s20 = smov 0   ;;  %s1168_s21 = smov 0  }
   0x8   :  { %s1170_s22 = smov 0   ;;  %s1172_s23 = smov 0  }
   0x9 LB: > { %s1187_s0 = sadd.s32 4294967295, %s1121_s23   ;;  %s658_s24 = sadd.s32 4294967294, %s1121_s23   ;;  %s1121_s23 = sphi %s1172_s23, %s1485_s23   ;;  %s1117_s22 = sphi %s1170_s22, %s1484_s22   ;;  %s1113_s21 = sphi %s1168_s21, %s1483_s21   ;;  %s1109_s20 = sphi %s1166_s20, %s1482_s20  }
   0xa   : > { %p65_p0 = scmp.ne.s32.totalorder %s1113_s21, %s1109_s20  ;;  %p1463_p1 = scmp.eq.s32.totalorder %s1187_s0, 0 }
   0xb   : > { %p158_p3 = scmp.eq.s32.totalorder %s658_s24, 1  ;;  %p659_p5 = scmp.ge.s32.totalorder %s1121_s23, 1 }
   0xc   : > { %p1196_p4 = por %p1463_p1, %p65_p0  ;;  %p165_p7 = scmp.lt.s32.totalorder %s1121_s23, 3 }
   0xd   : > { %p1201_p6 = por %p158_p3, %p65_p0  ;;  %s1123_s28 = smov [#allocation6]  }
   0xe   : > { %s1466_s25 = scalar_select %p1196_p4, 1, 0 }
   0xf   : > { %s1467_s26 = scalar_select %p1201_p6, 1, 0 }
  0x10   : > { %p1206_p8 = pnand %p659_p5, %p165_p7  ;;  %s180_s29 = sshll.u32 %s1123_s28, 4  ;;  %s1210_s29 = int_to_ptr.vmem [resolvable:$true] %s180_s29 }
  0x11   : > { %s1124_s6 = smov [#allocation8]   ;;  %s1125_s8 = smov [#allocation9]  }
  0x12   : > { %s1468_s27 = scalar_select %p1206_p8, 1, 0 }
  0x13   : > { %p867_p9 = pneg %p1206_p8  ;;  %s193_s7 = sshll.u32 %s1124_s6, 4  ;;  %s1221_s7 = int_to_ptr.vmem [resolvable:$true] %s193_s7 }
  0x14   : > { %s1223_s9 = sshll.u32 %s1125_s8, 4  ;;  %s933_s12 = scalar_lea.hbm %s1459_s2, 512  ;;  %s207_s9 = int_to_ptr.vmem [resolvable:$true] %s1223_s9 }
  0x15   : > { %p1217_p11 = pnand %p867_p9, %p1463_p1  ;;  %p934_p12 = scmp.ne.s32.totalorder %s1459_s2, %s933_s12 }
  0x16   : > { %p940_p5 = scmp.lt.u32.totalorder %s933_s12, %s1459_s2 }
  0x17   : > { %p1233_p13 = pneg %p1217_p11 }
  0x19   : > { %p936_p0 = pnand %p1233_p13, %p934_p12 }
  0x1b   : > { %p937_p3 = pneg %p936_p0 }
  0x1d   : > { %p942_p7 = pnand %p940_p5, %p937_p3 }
  0x1f   : > { %945 = shalt.err (!%p942_p7)
}
  0x20   : > { %s946_s18 = scalar_lea.vmem %s1210_s29, 512  ;;  %p954_p2 = scmp.lt.s32.totalorder %s1210_s29, %s1210_s29 }
  0x21   : > { %p947_p9 = scmp.ne.s32.totalorder %s1210_s29, %s946_s18  ;;  %p955_p6 = scmp.lt.s32.totalorder %s946_s18, %s946_s18 }
  0x23   : > { %p949_p10 = pnand %p947_p9, %p1233_p13  ;;  %p956_p12 = por %p955_p6, %p954_p2 }
  0x25   : > { %p950_p1 = pneg %p949_p10 }
  0x27   : > { %p957_p0 = pnand %p956_p12, %p950_p1 }
  0x29   : > { %960 = shalt.err (!%p957_p0)
}
  0x2a   : > { %s1126_s19 = smov 128   ;;  %s1127_s24 = smov 8  }
  0x2b   : > { %870 = dma.hbm_to_vmem [thread:$0]  (!%p1217_p11), %s1459_s2, 512, %s1210_s29, [#allocation7], %s1126_s19, %s1126_s19, %s1127_s24  }
  0x2c   : > { %s961_s11 = scalar_lea.hbm %s1460_s3, 2048 }
  0x2d   : > { %p962_p1 = scmp.ne.s32.totalorder %s1460_s3, %s961_s11  ;;  %p968_p10 = scmp.lt.u32.totalorder %s961_s11, %s1460_s3 }
  0x2f   : > { %p964_p2 = pnand %p962_p1, %p1233_p13 }
  0x31   : > { %p965_p6 = pneg %p964_p2 }
  0x33   : > { %p970_p3 = pnand %p968_p10, %p965_p6 }
  0x35   : > { %973 = shalt.err (!%p970_p3)
}
  0x36   : > { %s974_s29 = scalar_lea.vmem %s1221_s7, 2048  ;;  %p982_p12 = scmp.lt.s32.totalorder %s1221_s7, %s1221_s7 }
  0x37   : > { %p975_p5 = scmp.ne.s32.totalorder %s1221_s7, %s974_s29  ;;  %p983_p0 = scmp.lt.s32.totalorder %s974_s29, %s974_s29 }
  0x39   : > { %p977_p7 = pnand %p975_p5, %p1233_p13  ;;  %p984_p1 = por %p983_p0, %p982_p12 }
  0x3b   : > { %p978_p9 = pneg %p977_p7 }
  0x3d   : > { %p985_p2 = pnand %p984_p1, %p978_p9 }
  0x3f   : > { %988 = shalt.err (!%p985_p2)
}
  0x40   : > { %873 = dma.hbm_to_vmem [thread:$0]  (!%p1217_p11), %s1460_s3, 2048, %s1221_s7, [#allocation7], %s1126_s19, %s1126_s19, %s1127_s24  }
  0x41   : > { %s989_s8 = scalar_lea.hbm %s1461_s4, 2048 }
  0x42   : > { %p990_p6 = scmp.ne.s32.totalorder %s1461_s4, %s989_s8  ;;  %p996_p5 = scmp.lt.u32.totalorder %s989_s8, %s1461_s4 }
  0x44   : > { %p992_p10 = pnand %p990_p6, %p1233_p13 }
  0x46   : > { %p993_p3 = pneg %p992_p10 }
  0x48   : > { %p998_p7 = pnand %p996_p5, %p993_p3 }
  0x4a   : > { %1001 = shalt.err (!%p998_p7)
}
  0x4b   : > { %s1002_s14 = scalar_lea.vmem %s207_s9, 2048  ;;  %p1010_p1 = scmp.lt.s32.totalorder %s207_s9, %s207_s9 }
  0x4c   : > { %p1003_p9 = scmp.ne.s32.totalorder %s207_s9, %s1002_s14  ;;  %p1011_p2 = scmp.lt.s32.totalorder %s1002_s14, %s1002_s14 }
  0x4e   : > { %p1005_p12 = pnand %p1003_p9, %p1233_p13  ;;  %p1012_p4 = por %p1011_p2, %p1010_p1 }
  0x50   : > { %p1006_p0 = pneg %p1005_p12 }
  0x52   : > { %p1013_p8 = pnand %p1012_p4, %p1006_p0 }
  0x54   : > { %1016 = shalt.err (!%p1013_p8)
}
  0x55   : > { %876 = dma.hbm_to_vmem [thread:$0]  (!%p1217_p11), %s1461_s4, 2048, %s207_s9, [#allocation10], %s1126_s19, %s1126_s19, %s1127_s24  }
  0x56   : > { %s1306_s15 = sadd.s32 1, %s1121_s23   ;;  %s52_s29 = sadd.s32 1, %s1117_s22 }
  0x57   : > { %s49_s30 = ssub.s32 %s1121_s23, %s1306_s15  ;;  %p59_p8 = scmp.ne.s32.totalorder %s1117_s22, %s1113_s21 }
  0x58   : > { %p50_p4 = scmp.eq.s32.totalorder %s49_s30, 0  ;;  %p60_p13 = scmp.eq.s32.totalorder %s1121_s23, 0 }
  0x59   : > { %p888_p6 = scmp.lt.s32.totalorder %s1121_s23, 2  ;;  %p1471_p3 = scmp.eq.s32.totalorder %s1187_s0, 1 }
  0x5a   : > { %s1316_s17 = scalar_select %p50_p4, %s1117_s22, %s52_s29  }
  0x5b   : > { %p61_p10 = por %p60_p13, %p59_p8  ;;  %p1320_p5 = por %p1471_p3, %p59_p8 }
  0x5c   : > { %s220_s28 = sand.u32 1, %s1117_s22   ;;  %s665_s6 = sshll.u32 %s1121_s23, 7 }
  0x5d   : > { %s664_s9 = sshll.u32 %s220_s28, 3  ;;  %s1329_s8 = scalar_lea.hbm %s1458_s1, %s665_s6 }
  0x5e   : > { %s224_s10 = scalar_lea.vmem [#allocation3], %s664_s9  ;;  %p1331_p11 = pnand %p888_p6, %p61_p10 }
  0x5f   : > { %s231_s11 = sshll.u32 %s224_s10, 4  ;;  %s221_s13 = scalar_lea.sflag [#allocation4], %s220_s28  ;;  %s1335_s11 = int_to_ptr.vmem [resolvable:$true] %s231_s11 }
  0x60   : > { %s1017_s14 = scalar_lea.hbm %s1329_s8, 128  ;;  %p1019_p9 = pneg %p1331_p11 }
  0x61   : > { %p1018_p7 = scmp.ne.s32.totalorder %s1329_s8, %s1017_s14  ;;  %s1022_s30 = scalar_lea.hbm %s1458_s1, 256 }
  0x62   : > { %p1023_p1 = scmp.lt.u32.totalorder %s1329_s8, %s1458_s1  ;;  %p1024_p2 = scmp.lt.u32.totalorder %s1022_s30, %s1017_s14 }
  0x63   : > { %p1020_p12 = pnand %p1019_p9, %p1018_p7  ;;  %p1026_p8 = scmp.lt.u32.totalorder %s1017_s14, %s1329_s8 }
  0x64   : > { %p1025_p4 = por %p1024_p2, %p1023_p1 }
  0x65   : > { %p1021_p0 = pneg %p1020_p12 }
  0x66   : > { %p1027_p13 = por %p1026_p8, %p1025_p4 }
  0x68   : > { %p1028_p6 = pnand %p1027_p13, %p1021_p0 }
  0x6a   : > { %1031 = shalt.err (!%p1028_p6)
}
  0x6b   : > { %s1032_s28 = scalar_lea.vmem %s1335_s11, 128  ;;  %s1128_s9 = smov [#allocation3]  }
  0x6c   : > { %p1033_p10 = scmp.ne.s32.totalorder %s1335_s11, %s1032_s28  ;;  %s1037_s19 = sshll.u32 %s1128_s9, 4  ;;  %s1038_s19 = int_to_ptr.vmem [resolvable:$false] %s1037_s19 }
  0x6d   : > { %s1039_s24 = scalar_lea.vmem %s1038_s19, 256  ;;  %p1040_p12 = scmp.lt.s32.totalorder %s1335_s11, %s1038_s19 }
  0x6e   : > { %p1035_p3 = pnand %p1033_p10, %p1019_p9  ;;  %p1041_p1 = scmp.lt.s32.totalorder %s1039_s24, %s1032_s28 }
  0x70   : > { %p1036_p7 = pneg %p1035_p3  ;;  %p1042_p2 = por %p1041_p1, %p1040_p12 }
  0x72   : > { %p1043_p4 = pnand %p1042_p2, %p1036_p7 }
  0x74   : > { %1046 = shalt.err (!%p1043_p4)
}
  0x75   : > { %880 = dma.hbm_to_vmem [thread:$0]  (!%p1331_p11), %s1329_s8, 128, %s1335_s11, %s221_s13  }
  0x76   : > { %p1474_p0 = scmp.ne.s32.totalorder %s1468_s27, 0 }
  0x77   : > { %s1365_s10 = sand.u32 (!%p1474_p0), 1, %s1113_s21   ;;  %p1475_p9 = scmp.ne.s32.totalorder (!%p1474_p0), %s1466_s25, 0 }
  0x78   : > { %240 = sbr.rel (%p1474_p0) target bundleno = 802 (0x322), region = 40  ;;  %s667_s14 = sshll.u32 (!%p1474_p0), %s1365_s10, 3 }
  0x79   : > { %s243_s7 = scalar_lea.sflag (!%p1474_p0), [#allocation4], %s1365_s10  ;;  %s1371_s16 = scalar_lea.vmem (!%p1474_p0), [#allocation3], %s667_s14 }
  0x7f   : > { %1092 = dma.done.wait (%p1475_p9), %s243_s7, 128  }
  0x80   : > { %1094 = vsyncadd (%p1475_p9), %s243_s7, 4294967168  ;;  %p1476_p11 = scmp.eq.s32.totalorder %s1187_s0, 0 }
  0x82   : > { %1096 = dma.done.wait (%p1476_p11), [#allocation7], 2560   ;;  %p1477_p8 = pmov %p1476_p11 }
  0x84   : > { %1098 = vsyncadd (%p1477_p8), [#allocation7], 4294964736  ;;  %p1478_p13 = pmov %p1477_p8 }
  0x85   : > { %p1479_p6 = pmov %p1477_p8 }
  0x86   : > { %1100 = dma.done.wait (%p1478_p13), [#allocation10], 2048  }
  0x87   : > { %1102 = vsyncadd (%p1479_p6), [#allocation10], 4294965248  ;;  %v1129_v0 = vmov 0.0|0.0   ;;  %vm1130_vm0 = vmmov 0   ;;  %v1131_v1 = vmov 0.0   ;;  %v287_v2 = vld [vmem:[#allocation6] sm:$0xff] }
  0x88   : > { %797 = vmatprep.subr.bf16.mxu0 %v1129_v0  ;;  %724 = vmatprep.mubr.msk.f32.mxu0 %vm1130_vm0, %v1131_v1  ;;  %v288_v3 = vld [vmem:[#allocation6 + $0x8] sm:$0xff]  ;;  %v289_v4 = vld [vmem:[#allocation6 + $0x10] sm:$0xff]  ;;  %v290_v6 = vld [vmem:[#allocation6 + $0x18] sm:$0xff]  ;;  %vm291_vm1 = vcmask 261120   ;;  %s285_s25 = sld [smem:[#allocation2]]  ;;  %s284_s27 = scalar_lea.vmem [#allocation11], %s667_s14 }
  0x89   : > { %803 = vmatprep.subr.bf16.mxu1 %v1129_v0  ;;  %759 = vmatprep.mubr.msk.f32.mxu1 %vm1130_vm0, %v1131_v1  ;;  %v798_v5 = vpack.c.bf16 %v288_v3, %v287_v2  ;;  %v369_v7 = vld [vmem:[#allocation8] sm:$0xff]  ;;  %v370_v8 = vld [vmem:[#allocation8 + $0x8] sm:$0xff]  ;;  %v371_v9 = vld [vmem:[#allocation8 + $0x10] sm:$0xff]  ;;  %v801_v11 = vpack.c.bf16 %v290_v6, %v289_v4  ;;  %s559_s8 = sshll.u32 %s284_s27, 4  ;;  %s674_s11 = sshll.u32 %s1187_s0, 7  ;;  %s1410_s8 = int_to_ptr.vmem [resolvable:$true] %s559_s8 }
  0x8a   : > { %v372_v10 = vld [vmem:[#allocation8 + $0x18] sm:$0xff]  ;;  %v804_v12 = vpack.c.bf16 %v370_v8, %v369_v7  ;;  %v373_v14 = vld [vmem:[#allocation8 + $0x20] sm:$0xff]  ;;  %v374_v15 = vld [vmem:[#allocation8 + $0x28] sm:$0xff]  ;;  %s1415_s30 = scalar_lea.hbm %s1462_s5, %s674_s11  ;;  %s546_s29 = scalar_lea.sflag [#allocation5], %s1365_s10 }
  0x8b   : > { %799 = vmatpush3.bf16.msra.mxu0 %v798_v5  ;;  %v807_v13 = vpack.c.bf16 %v372_v10, %v371_v9  ;;  %v286_v16 = vld [vmem:[%s1371_s16] sm:$0xff]  ;;  %v810_v17 = vpack.c.bf16 %v374_v15, %v373_v14  ;;  %v377_v21 = vld [vmem:[#allocation8 + $0x40] sm:$0xff]  ;;  %v378_v22 = vld [vmem:[#allocation8 + $0x48] sm:$0xff]  ;;  %s1047_s6 = scalar_lea.vmem %s1410_s8, 128  ;;  %s1132_s0 = smov [#allocation11]  }
  0x8c   : > { %800 = vmatprep.subr.bf16.mxu0 %v1129_v0  ;;  %805 = vmatpush3.bf16.msra.mxu1 %v804_v12  ;;  %v375_v18 = vld [vmem:[#allocation8 + $0x30] sm:$0xff]  ;;  %v376_v19 = vld [vmem:[#allocation8 + $0x38] sm:$0xff]  ;;  %v816_v23 = vpack.c.bf16 %v378_v22, %v377_v21  ;;  %v381_v27 = vld [vmem:[#allocation8 + $0x60] sm:$0xff]  ;;  %p1048_p10 = scmp.ne.s32.totalorder %s1410_s8, %s1047_s6  ;;  %s1051_s28 = sshll.u32 %s1132_s0, 4  ;;  %s1052_s28 = int_to_ptr.vmem [resolvable:$false] %s1051_s28 }
  0x8d   : > { %806 = vmatprep.subr.bf16.mxu1 %v1129_v0  ;;  %v813_v20 = vpack.c.bf16 %v376_v19, %v375_v18  ;;  %v379_v24 = vld [vmem:[#allocation8 + $0x50] sm:$0xff]  ;;  %v380_v25 = vld [vmem:[#allocation8 + $0x58] sm:$0xff]  ;;  %v382_v28 = vld [vmem:[#allocation8 + $0x68] sm:$0xff]  ;;  %s1053_s9 = scalar_lea.vmem %s1052_s28, 256  ;;  %p1054_p12 = scmp.lt.s32.totalorder %s1410_s8, %s1052_s28 }
  0x8e   : > { %v819_v26 = vpack.c.bf16 %v380_v25, %v379_v24  ;;  %v822_v29 = vpack.c.bf16 %v382_v28, %v381_v27  ;;  %v383_v30 = vld [vmem:[#allocation8 + $0x70] sm:$0xff]  ;;  %v384_v31 = vld [vmem:[#allocation8 + $0x78] sm:$0xff]  ;;  %v458_v33 = vld [vmem:[#allocation9] sm:$0xff]  ;;  %v366_v54 = vstv %s285_s25  ;;  %p1049_p3 = pnand %p1048_p10, %p1320_p5  ;;  %p1055_p1 = scmp.lt.s32.totalorder %s1053_s9, %s1047_s6 }
  0x8f   : > { %802 = vmatpush3.bf16.msra.mxu0 %v801_v11  ;;  %v825_v32 = vpack.c.bf16 %v384_v31, %v383_v30  ;;  %v459_v34 = vld [vmem:[#allocation9 + $0x8] sm:$0xff]  ;;  %v460_v35 = vld [vmem:[#allocation9 + $0x10] sm:$0xff]  ;;  %v461_v37 = vld [vmem:[#allocation9 + $0x18] sm:$0xff] }
  0x90   : > { %827 = vmatprep.subr.bf16.mxu0 %v1129_v0  ;;  %808 = vmatpush3.bf16.msra.mxu1 %v807_v13  ;;  %v828_v36 = vpack.c.bf16 %v459_v34, %v458_v33  ;;  %v831_v38 = vpack.c.bf16 %v461_v37, %v460_v35  ;;  %v462_v39 = vld [vmem:[#allocation9 + $0x20] sm:$0xff]  ;;  %v463_v40 = vld [vmem:[#allocation9 + $0x28] sm:$0xff]  ;;  %v464_v42 = vld [vmem:[#allocation9 + $0x30] sm:$0xff]  ;;  %p1050_p7 = pneg %p1049_p3  ;;  %p1056_p2 = por %p1055_p1, %p1054_p12 }
  0x91   : > { %809 = vmatprep.subr.bf16.mxu1 %v1129_v0  ;;  %v834_v41 = vpack.c.bf16 %v463_v40, %v462_v39  ;;  %v465_v43 = vld [vmem:[#allocation9 + $0x38] sm:$0xff]  ;;  %v466_v45 = vld [vmem:[#allocation9 + $0x40] sm:$0xff]  ;;  %v467_v46 = vld [vmem:[#allocation9 + $0x48] sm:$0xff] }
  0x92   : > { %725 = vmatmul.mubr.msk.f32.vlgmr.msra.gmra.mrb[0].mxu0 %vm291_vm1, %v286_v16  ;;  %v837_v44 = vpack.c.bf16 %v465_v43, %v464_v42  ;;  %v840_v47 = vpack.c.bf16 %v467_v46, %v466_v45  ;;  %v468_v48 = vld [vmem:[#allocation9 + $0x50] sm:$0xff]  ;;  %v469_v49 = vld [vmem:[#allocation9 + $0x58] sm:$0xff]  ;;  %v470_v51 = vld [vmem:[#allocation9 + $0x60] sm:$0xff]  ;;  %p1057_p4 = pnand %p1056_p2, %p1050_p7 }
  0x93   : > { %794 = vmatprep.mubr.msk.f32.mxu0 %vm1130_vm0, %v1131_v1  ;;  %829 = vmatpush3.bf16.msra.mxu0 %v828_v36  ;;  %v843_v50 = vpack.c.bf16 %v469_v49, %v468_v48  ;;  %v471_v52 = vld [vmem:[#allocation9 + $0x68] sm:$0xff]  ;;  %v472_v59 = vld [vmem:[#allocation9 + $0x70] sm:$0xff]  ;;  %v473_v60 = vld [vmem:[#allocation9 + $0x78] sm:$0xff] }
  0x94   : > { %811 = vmatpush3.bf16.msra.mxu1 %v810_v17  ;;  %830 = vmatprep.subr.bf16.mxu0 %v1129_v0  ;;  %v846_v53 = vpack.c.bf16 %v471_v52, %v470_v51  ;;  %v849_v61 = vpack.c.bf16 %v473_v60, %v472_v59 }
  0x95   : > { %812 = vmatprep.subr.bf16.mxu1 %v1129_v0 }
  0x97   : > { %832 = vmatpush3.bf16.msra.mxu0 %v831_v38 }
  0x98   : > { %814 = vmatpush3.bf16.msra.mxu1 %v813_v20  ;;  %833 = vmatprep.subr.bf16.mxu0 %v1129_v0 }
  0x99   : > { %815 = vmatprep.subr.bf16.mxu1 %v1129_v0 }
  0x9b   : > { %835 = vmatpush3.bf16.msra.mxu0 %v834_v41 }
  0x9c   : > { %817 = vmatpush3.bf16.msra.mxu1 %v816_v23  ;;  %836 = vmatprep.subr.bf16.mxu0 %v1129_v0 }
  0x9d   : > { %818 = vmatprep.subr.bf16.mxu1 %v1129_v0 }
  0x9f   : > { %838 = vmatpush3.bf16.msra.mxu0 %v837_v44 }
  0xa0   : > { %820 = vmatpush3.bf16.msra.mxu1 %v819_v26  ;;  %839 = vmatprep.subr.bf16.mxu0 %v1129_v0 }
  0xa1   : > { %821 = vmatprep.subr.bf16.mxu1 %v1129_v0 }
  0xa3   : > { %841 = vmatpush3.bf16.msra.mxu0 %v840_v47 }
  0xa4   : > { %823 = vmatpush3.bf16.msra.mxu1 %v822_v29  ;;  %842 = vmatprep.subr.bf16.mxu0 %v1129_v0 }
  0xa5   : > { %824 = vmatprep.subr.bf16.mxu1 %v1129_v0 }
  0xa7   : > { %844 = vmatpush3.bf16.msra.mxu0 %v843_v50 }
  0xa8   : > { %826 = vmatpush3.bf16.msra.mxu1 %v825_v32  ;;  %845 = vmatprep.subr.bf16.mxu0 %v1129_v0 }
  0xab   : > { %847 = vmatpush3.bf16.msra.mxu0 %v846_v53 }
  0xac   : > { %848 = vmatprep.subr.bf16.mxu0 %v1129_v0 }
  0xaf   : > { %850 = vmatpush3.bf16.msra.mxu0 %v849_v61 }
 0x165   : > { %v361_v55 = vpop.f32.mrb[0].mxu0 }
 0x166   : > { %vm365_vm2 = vcmp.gt.f32.partialorder %v361_v55, 0.0  ;;  %v367_v56 = vmul.f32 %v366_v54, %v361_v55  ;;  %v726_v57 = vpop.f32.mrb[1].mxu0 }
 0x168   : > { %v368_v58 = vsel %vm365_vm2, %v361_v55, %v367_v56 }
 0x169   : > { %760 = vmatmul.mubr.f32.vlgmr.msra.gmra.mrb[0].mxu1 %v368_v58 }
 0x23c   : > { %v451_v62 = vpop.f32.mrb[0].mxu1 }
 0x23d   : > { %vm455_vm3 = vcmp.gt.f32.partialorder %v451_v62, 0.0  ;;  %v456_v63 = vmul.f32 %v451_v62, %v366_v54  ;;  %v761_v0 = vpop.f32.mrb[1].mxu1 }
 0x23f   : > { %v457_v1 = vsel %vm455_vm3, %v451_v62, %v456_v63 }
 0x240   : > { %795 = vmatmul.mubr.f32.vlgmr.msra.gmra.mrb[2].mxu0 %v457_v1 }
 0x313   : > { %v540_v2 = vpop.f32.mrb[2].mxu0 }
 0x314   : > { %544 = vst [vmem:[%s284_s27] sm:$0xff] %v540_v2  ;;  %v796_v3 = vpop.f32.mrb[3].mxu0 }
 0x315   : > { %1060 = shalt.err (!%p1057_p4)
}
 0x316   : > { %s1061_s19 = scalar_lea.hbm %s1415_s30, 128  ;;  %s1065_s14 = scalar_lea.hbm %s1462_s5, 256 }
 0x317   : > { %p1062_p0 = scmp.ne.s32.totalorder %s1415_s30, %s1061_s19  ;;  %p1066_p8 = scmp.lt.u32.totalorder %s1415_s30, %s1462_s5 }
 0x318   : > { %p1067_p13 = scmp.lt.u32.totalorder %s1065_s14, %s1061_s19  ;;  %p1069_p10 = scmp.lt.u32.totalorder %s1061_s19, %s1415_s30 }
 0x319   : > { %p1063_p9 = pnand %p1062_p0, %p1320_p5 }
 0x31a   : > { %p1068_p6 = por %p1067_p13, %p1066_p8 }
 0x31b   : > { %p1064_p11 = pneg %p1063_p9 }
 0x31c   : > { %p1070_p3 = por %p1069_p10, %p1068_p6 }
 0x31e   : > { %p1071_p7 = pnand %p1070_p3, %p1064_p11 }
 0x320   : > { %1074 = shalt.err (!%p1071_p7)
}
 0x321   : > { %865 = dma.vmem_to_hbm [thread:$0]  (%p1320_p5), %s1410_s8, 128, %s1415_s30, %s546_s29  }
 0x322 PF: > { %s571_s25 = sand.u32 1, %s1109_s20   ;;  %p1480_p12 = scmp.ne.s32.totalorder %s1467_s26, 0 }
 0x323   : > { %p1481_p1 = scmp.ge.s32.totalorder %s1121_s23, 2  ;;  %s572_s27 = scalar_lea.sflag [#allocation5], %s571_s25 }
 0x325   : > { %p882_p2 = pnand %p1481_p1, %p1480_p12 }
 0x327   : > { %1104 = dma.done.wait (!%p882_p2), %s572_s27, 128  }
 0x328   : > { %1106 = vsyncadd (!%p882_p2), %s572_s27, 4294967168  ;;  %p21_p4 = scmp.ge.s32.totalorder %s1306_s15, 4   ;;  %s1482_s20 = smov %s1113_s21 }
 0x329   : > { %s1483_s21 = smov %s1117_s22  ;;  %s1484_s22 = smov %s1316_s17 }
 0x32a   : > { %s1485_s23 = smov %s1306_s15  ;;  %23 = sbr.rel (!%p21_p4) target bundleno = 9 (0x9), region = 97 }
 0x331   :  { %577 = vsyncpa [#allocation4], 1 }
 0x332   :  { %579 = vsyncpa [#allocation4 + $0x1], 1 }
 0x333   :  { %580 = vsyncpa [#allocation7], 1 }
 0x334   :  { %581 = vsyncpa [#allocation10], 1 }
 0x335   :  { %582 = vsyncpa [#allocation5], 1 }
 0x336   :  { %584 = vsyncpa [#allocation5 + $0x1], 1 }

</bundles_post_ra>
